<compile_context>
chip_gen: v5e
topology: v5e:2x2
jax: 0.10.0
libtpu: 0.0.40
codegen_flags: <defaults>
</compile_context>

<pallas_src>
import jax
import jax.numpy as jnp
from jax.experimental import pallas as pl
from jax.experimental.pallas import tpu as pltpu

_MIB = 1 << 20


def _vmem_limit_bytes():
    """Generation-aware scoped-VMEM budget (128 MiB v5e/v6e, 64 MiB v7x)."""
    try:
        cap = pltpu.get_tpu_info().vmem_capacity_bytes
    except Exception:  # no TPU info available -> conservative default
        cap = 64 * _MIB
    # ~108 MiB on 128-MiB parts, ~48 MiB on 64-MiB parts.
    return int(max(32 * _MIB, min(cap - 16 * _MIB, 0.85 * cap)))


# ---------------------------------------------------------------------------
# Fused per-batch kernel: global max pool + tiny MLP + sigmoid + broadcast mul.
# x block: (1, C, HW)  (C on sublanes, HW on lanes).
# ---------------------------------------------------------------------------
def _fused_kernel(x_ref, w1_ref, b1_ref, w2_ref, b2_ref, o_ref):
    x = x_ref[0]                                         # (C, HW)
    mx = jnp.max(x, axis=1, keepdims=True)               # lane (XLU) reduce -> (C, 1)
    # N=1 MXU mat-vecs, accepted knowingly (kernel is HBM-bound and avoiding
    # the MXU would need an extra XLU transpose of the pooled column).
    h1 = jnp.dot(w1_ref[...], mx, preferred_element_type=jnp.float32) + b1_ref[...]
    h2 = jnp.dot(w2_ref[...], h1, preferred_element_type=jnp.float32) + b2_ref[...]
    # Bug preserved: attention = sigmoid(max branch) + sigmoid(max branch).
    att = 2.0 * jax.nn.sigmoid(h2)                       # (C, 1) f32
    o_ref[0] = (x * att).astype(o_ref.dtype)             # lane-broadcast multiply


# ---------------------------------------------------------------------------
# Tiled path, pass 1: running max over HW tiles (accumulator = output block).
# Tail tile (HW not a multiple of hw_tile) is masked with -inf.
# ---------------------------------------------------------------------------
def _make_pool_kernel(HW, hw_tile):
    needs_mask = (HW % hw_tile) != 0

    def _pool_kernel(x_ref, mx_ref):
        t = pl.program_id(1)

        @pl.when(t == 0)
        def _():
            mx_ref[...] = jnp.full(mx_ref.shape, -jnp.inf, dtype=mx_ref.dtype)

        x = x_ref[0]                                     # (C, hw_tile)
        if needs_mask:
            lane = jax.lax.broadcasted_iota(jnp.int32, x.shape, 1)
            valid = (t * hw_tile + lane) < HW
            x = jnp.where(valid, x, jnp.asarray(-jnp.inf, dtype=x.dtype))
        tile_max = jnp.max(x, axis=1, keepdims=True).astype(jnp.float32)
        mx_ref[0] = jnp.maximum(mx_ref[0], tile_max)

    return _pool_kernel


# ---------------------------------------------------------------------------
# Tiled path, pass 2: fold the tiny MLP + sigmoid into the apply pass.
# The per-batch (C, 1) attention lives in an f32 VMEM scratch computed once
# per batch (t == 0) and reused across that batch's HW tiles.
# ---------------------------------------------------------------------------
def _apply_kernel(x_ref, pooled_ref, w1_ref, b1_ref, w2_ref, b2_ref, o_ref, att_sc):
    t = pl.program_id(1)

    @pl.when(t == 0)
    def _():
        mx = pooled_ref[0]                               # (C, 1) f32
        h1 = jnp.dot(w1_ref[...], mx, preferred_element_type=jnp.float32) + b1_ref[...]
        h2 = jnp.dot(w2_ref[...], h1, preferred_element_type=jnp.float32) + b2_ref[...]
        att_sc[...] = 2.0 * jax.nn.sigmoid(h2)           # (C, 1) f32

    o_ref[0] = (x_ref[0] * att_sc[...]).astype(o_ref.dtype)


def _pick_hw_tile(HW, C, itemsize, budget_bytes):
    """Largest 128-multiple lane tile whose apply-pass working set fits budget.

    Apply pass holds the x tile and the out tile, each double-buffered:
    ~4 * C * tile * itemsize bytes.  Never falls back to the full HW slab.
    """
    per_lane_bytes = 4 * C * itemsize
    tile = (budget_bytes // per_lane_bytes) // 128 * 128
    hw_padded = ((HW + 127) // 128) * 128
    tile = min(int(tile), hw_padded)
    return max(128, tile)


def channel_attention(x_nchw, w1, b1, w2, b2, *, hw_tile=None):
    """x_nchw: (B, C, H, W).  w1: (C//2, C), b1: (C//2,), w2: (C, C//2), b2: (C,)."""
    B, C, H, W = x_nchw.shape
    HW = H * W
    Ch = w1.shape[0]
    assert jnp.issubdtype(x_nchw.dtype, jnp.floating), \
        "pool accumulator init uses -inf; integer inputs unsupported"

    # Free layout change: NCHW -> (B, C, HW).  No transposes anywhere.
    x = x_nchw.reshape(B, C, HW)
    b1c = b1.reshape(Ch, 1)
    b2c = b2.reshape(C, 1)

    itemsize = x.dtype.itemsize
    slab_bytes = C * HW * itemsize
    weight_bytes = (w1.size + b1.size + w2.size + b2.size) * w1.dtype.itemsize

    vmem_limit = _vmem_limit_bytes()
    # TODO(synk): on v7x, shard the batch axis across the 2 TensorCores with
    # pltpu.CORE_PARALLEL (or a core_map) once core-count detection is plumbed;
    # plain "parallel" is safe on every generation.
    cparams_fused = pltpu.CompilerParams(
        dimension_semantics=("parallel",), vmem_limit_bytes=vmem_limit)

    # ---------------- Fused single-pass path (1 read + 1 write of x) --------
    # Gate on the actual VMEM budget: x and out tiles are double-buffered
    # (4x slab) plus weights plus a small headroom.
    fused_fits = (hw_tile is None and
                  4 * slab_bytes + 2 * weight_bytes + 2 * _MIB <= vmem_limit)
    if fused_fits:
        out = pl.pallas_call(
            _fused_kernel,
            out_shape=jax.ShapeDtypeStruct((B, C, HW), x.dtype),
            grid_spec=pltpu.PrefetchScalarGridSpec(
                num_scalar_prefetch=0,
                grid=(B,),
                in_specs=[
                    pl.BlockSpec((1, C, HW), lambda b: (b, 0, 0)),
                    pl.BlockSpec((Ch, C), lambda b: (0, 0)),
                    pl.BlockSpec((Ch, 1), lambda b: (0, 0)),
                    pl.BlockSpec((C, Ch), lambda b: (0, 0)),
                    pl.BlockSpec((C, 1), lambda b: (0, 0)),
                ],
                out_specs=pl.BlockSpec((1, C, HW), lambda b: (b, 0, 0)),
            ),
            compiler_params=cparams_fused,
        )(x, w1, b1c, w2, b2c)
        return out.reshape(B, C, H, W)

    # TODO(synk): middle path — per-batch manual-DMA fused kernel
    # (memory_space=pl.ANY + one VMEM slab + make_async_copy) for slabs that
    # fit once but not 4x in VMEM, keeping the 1-read-1-write regime.

    # ---------------- Tiled two-pass path (large HW) -------------------------
    if hw_tile is None:
        hw_tile = _pick_hw_tile(HW, C, itemsize, int(0.75 * vmem_limit))
    assert hw_tile % 128 == 0, "hw_tile must be a multiple of 128"
    nt = pl.cdiv(HW, hw_tile)        # tail tile masked in the pool pass

    pooled = pl.pallas_call(
        _make_pool_kernel(HW, hw_tile),
        out_shape=jax.ShapeDtypeStruct((B, C, 1), jnp.float32),
        grid_spec=pltpu.PrefetchScalarGridSpec(
            num_scalar_prefetch=0,
            grid=(B, nt),
            in_specs=[pl.BlockSpec((1, C, hw_tile), lambda b, t: (b, 0, t))],
            out_specs=pl.BlockSpec((1, C, 1), lambda b, t: (b, 0, 0)),
        ),
        compiler_params=pltpu.CompilerParams(
            dimension_semantics=("parallel", "arbitrary"),
            vmem_limit_bytes=vmem_limit),
    )(x)

    out = pl.pallas_call(
        _apply_kernel,
        out_shape=jax.ShapeDtypeStruct((B, C, HW), x.dtype),
        grid_spec=pltpu.PrefetchScalarGridSpec(
            num_scalar_prefetch=0,
            grid=(B, nt),
            in_specs=[
                pl.BlockSpec((1, C, hw_tile), lambda b, t: (b, 0, t)),
                pl.BlockSpec((1, C, 1), lambda b, t: (b, 0, 0)),
                pl.BlockSpec((Ch, C), lambda b, t: (0, 0)),
                pl.BlockSpec((Ch, 1), lambda b, t: (0, 0)),
                pl.BlockSpec((C, Ch), lambda b, t: (0, 0)),
                pl.BlockSpec((C, 1), lambda b, t: (0, 0)),
            ],
            out_specs=pl.BlockSpec((1, C, hw_tile), lambda b, t: (b, 0, t)),
            scratch_shapes=[pltpu.VMEM((C, 1), jnp.float32)],
        ),
        compiler_params=pltpu.CompilerParams(
            # t axis must be "arbitrary": the per-batch attention scratch is
            # computed at t == 0 and reused across that batch's HW tiles.
            dimension_semantics=("parallel", "arbitrary"),
            vmem_limit_bytes=vmem_limit),
    )(x, pooled, w1, b1c, w2, b2c)
    return out.reshape(B, C, H, W)


def channel_attention_ref(x, w1, b1, w2, b2):
    """Pure-JAX reference mirroring the PyTorch forward (bug included)."""
    mx = jnp.max(x, axis=(2, 3))                       # global max pool -> (B, C)
    h1 = mx @ w1.T + b1                                # mlp1
    h2 = jax.nn.sigmoid(h1 @ w2.T + b2)                # sigmoid(mlp2(.))
    att = h2 + h2                                      # max branch + (buggy) "avg" branch
    return x * att[:, :, None, None]


if __name__ == "__main__":
    B, C, H, W = 2, 4, 16, 16          # input_feature_dim=16, channel_dim=4
    Ch = C // 2

    key = jax.random.PRNGKey(0)
    kx, k1, k2, k3, k4 = jax.random.split(key, 5)
    x = jax.random.normal(kx, (B, C, H, W), dtype=jnp.float32)
    # Parameters with nn.Linear(C, C//2) / nn.Linear(C//2, C) shapes.
    w1 = jax.random.normal(k1, (Ch, C), dtype=jnp.float32) * 0.5
    b1 = jax.random.normal(k2, (Ch,), dtype=jnp.float32) * 0.1
    w2 = jax.random.normal(k3, (C, Ch), dtype=jnp.float32) * 0.5
    b2 = jax.random.normal(k4, (C,), dtype=jnp.float32) * 0.1

    ref = channel_attention_ref(x, w1, b1, w2, b2)

    # Path 1: fused single-pass kernel (default for small per-batch slabs).
    out_fused = jax.block_until_ready(channel_attention(x, w1, b1, w2, b2))
    assert out_fused.shape == (B, C, H, W)
    assert jnp.allclose(out_fused, ref, atol=1e-5, rtol=1e-5)

    # Path 2: forced tiled two-pass path, divisor case (HW=256, 2 tiles).
    out_tiled = jax.block_until_ready(
        channel_attention(x, w1, b1, w2, b2, hw_tile=128))
    assert out_tiled.shape == (B, C, H, W)
    assert jnp.allclose(out_tiled, ref, atol=1e-5, rtol=1e-5)

    # Path 3: forced tiled path with a non-divisor HW (tail-tile masking).
    H2, W2 = 20, 20                    # HW=400 -> 4 tiles of 128, last has 16 valid
    x2 = jax.random.normal(kx, (B, C, H2, W2), dtype=jnp.float32)
    ref2 = channel_attention_ref(x2, w1, b1, w2, b2)
    out2 = jax.block_until_ready(
        channel_attention(x2, w1, b1, w2, b2, hw_tile=128))
    assert out2.shape == (B, C, H2, W2)
    assert jnp.allclose(out2, ref2, atol=1e-5, rtol=1e-5)

    print("KERNEL_OK")
</pallas_src>

<mosaic_0001>
module attributes {stable_mosaic.version = 11 : i64} {
  func.func @_fused_kernel(%arg0: i32, %arg1: memref<1x4x256xf32, #tpu.memory_space<vmem>>, %arg2: memref<2x4xf32, #tpu.memory_space<vmem>>, %arg3: memref<2x1xf32, #tpu.memory_space<vmem>>, %arg4: memref<4x2xf32, #tpu.memory_space<vmem>>, %arg5: memref<4x1xf32, #tpu.memory_space<vmem>>, %arg6: memref<1x4x256xf32, #tpu.memory_space<vmem>>) attributes {dimension_semantics = [#tpu.dimension_semantics<parallel>], iteration_bounds = array<i64: 2>, scalar_prefetch = 0 : i64, scratch_operands = 0 : i64, tpu.core_type = #tpu.core_type<tc>, window_params = [{transform_indices = @transform_0, window_bounds = array<i64: 1, 4, 256>}, {pipeline_mode = #tpu.pipeline_mode<synchronous>, transform_indices = @transform_1, window_bounds = array<i64: 2, 4>}, {pipeline_mode = #tpu.pipeline_mode<synchronous>, transform_indices = @transform_2, window_bounds = array<i64: 2, 1>}, {pipeline_mode = #tpu.pipeline_mode<synchronous>, transform_indices = @transform_3, window_bounds = array<i64: 4, 2>}, {pipeline_mode = #tpu.pipeline_mode<synchronous>, transform_indices = @transform_4, window_bounds = array<i64: 4, 1>}, {transform_indices = @transform_5, window_bounds = array<i64: 1, 4, 256>}]} {
    %c0 = arith.constant 0 : index
    %c0_0 = arith.constant 0 : index
    %c0_1 = arith.constant 0 : index
    %0 = vector.load %arg1[%c0, %c0_0, %c0_1] : memref<1x4x256xf32, #tpu.memory_space<vmem>>, vector<1x4x256xf32>
    %1 = vector.shape_cast %0 : vector<1x4x256xf32> to vector<4x256xf32>
    %cst = arith.constant dense<0xFF800000> : vector<4xf32>
    %2 = vector.multi_reduction <maximumf>, %1, %cst [1] : vector<4x256xf32> to vector<4xf32>
    %3 = vector.shape_cast %2 : vector<4xf32> to vector<4x1xf32>
    %c0_2 = arith.constant 0 : index
    %c0_3 = arith.constant 0 : index
    %4 = vector.load %arg2[%c0_2, %c0_3] : memref<2x4xf32, #tpu.memory_space<vmem>>, vector<2x4xf32>
    %cst_4 = arith.constant dense<0.000000e+00> : vector<2x1xf32>
    %5 = tpu.matmul %4, %3, %cst_4 {dimension_numbers = #tpu.dot_dimension_numbers<[1], [0], [0], [1], [0, 0, 1, 1], [], []>} : vector<2x4xf32>, vector<4x1xf32>, vector<2x1xf32> -> vector<2x1xf32>
    %c0_5 = arith.constant 0 : index
    %c0_6 = arith.constant 0 : index
    %6 = vector.load %arg3[%c0_5, %c0_6] : memref<2x1xf32, #tpu.memory_space<vmem>>, vector<2x1xf32>
    %7 = arith.addf %5, %6 : vector<2x1xf32>
    %c0_7 = arith.constant 0 : index
    %c0_8 = arith.constant 0 : index
    %8 = vector.load %arg4[%c0_7, %c0_8] : memref<4x2xf32, #tpu.memory_space<vmem>>, vector<4x2xf32>
    %cst_9 = arith.constant dense<0.000000e+00> : vector<4x1xf32>
    %9 = tpu.matmul %8, %7, %cst_9 {dimension_numbers = #tpu.dot_dimension_numbers<[1], [0], [0], [1], [0, 0, 1, 1], [], []>} : vector<4x2xf32>, vector<2x1xf32>, vector<4x1xf32> -> vector<4x1xf32>
    %c0_10 = arith.constant 0 : index
    %c0_11 = arith.constant 0 : index
    %10 = vector.load %arg5[%c0_10, %c0_11] : memref<4x1xf32, #tpu.memory_space<vmem>>, vector<4x1xf32>
    %11 = arith.addf %9, %10 : vector<4x1xf32>
    %12 = arith.negf %11 : vector<4x1xf32>
    %13 = math.exp %12 : vector<4x1xf32>
    %cst_12 = arith.constant 1.000000e+00 : f32
    %14 = vector.broadcast %cst_12 : f32 to vector<4x1xf32>
    %15 = arith.addf %14, %13 : vector<4x1xf32>
    %16 = arith.divf %14, %15 : vector<4x1xf32>
    %cst_13 = arith.constant 2.000000e+00 : f32
    %17 = vector.broadcast %cst_13 : f32 to vector<4x1xf32>
    %18 = arith.mulf %17, %16 : vector<4x1xf32>
    %19 = vector.broadcast %18 : vector<4x1xf32> to vector<4x256xf32>
    %20 = arith.mulf %1, %19 : vector<4x256xf32>
    %c0_14 = arith.constant 0 : index
    %c0_15 = arith.constant 0 : index
    %c0_16 = arith.constant 0 : index
    %21 = vector.load %arg6[%c0_14, %c0_15, %c0_16] : memref<1x4x256xf32, #tpu.memory_space<vmem>>, vector<1x4x256xf32>
    %22 = vector.shape_cast %21 : vector<1x4x256xf32> to vector<4x256xf32>
    %23 = vector.shape_cast %20 : vector<4x256xf32> to vector<1x4x256xf32>
    tpu.vector_store %arg6[%c0_14, %c0_15, %c0_16], %23 {strides = array<i32>} : memref<1x4x256xf32, #tpu.memory_space<vmem>>, vector<1x4x256xf32>,
    return
  }
  func.func @transform_0(%arg0: i32) -> (i32, i32, i32) {
    %c0_i32 = arith.constant 0 : i32
    %c0_i32_0 = arith.constant 0 : i32
    %c0_i32_1 = arith.constant 0 : i32
    return %arg0, %c0_i32, %c0_i32_0 : i32, i32, i32
  }
  func.func @transform_1(%arg0: i32) -> (i32, i32) {
    %c0_i32 = arith.constant 0 : i32
    %c0_i32_0 = arith.constant 0 : i32
    %c0_i32_1 = arith.constant 0 : i32
    return %c0_i32, %c0_i32_0 : i32, i32
  }
  func.func @transform_2(%arg0: i32) -> (i32, i32) {
    %c0_i32 = arith.constant 0 : i32
    %c0_i32_0 = arith.constant 0 : i32
    %c0_i32_1 = arith.constant 0 : i32
    return %c0_i32, %c0_i32_0 : i32, i32
  }
  func.func @transform_3(%arg0: i32) -> (i32, i32) {
    %c0_i32 = arith.constant 0 : i32
    %c0_i32_0 = arith.constant 0 : i32
    %c0_i32_1 = arith.constant 0 : i32
    return %c0_i32, %c0_i32_0 : i32, i32
  }
  func.func @transform_4(%arg0: i32) -> (i32, i32) {
    %c0_i32 = arith.constant 0 : i32
    %c0_i32_0 = arith.constant 0 : i32
    %c0_i32_1 = arith.constant 0 : i32
    return %c0_i32, %c0_i32_0 : i32, i32
  }
  func.func @transform_5(%arg0: i32) -> (i32, i32, i32) {
    %c0_i32 = arith.constant 0 : i32
    %c0_i32_0 = arith.constant 0 : i32
    %c0_i32_1 = arith.constant 0 : i32
    return %arg0, %c0_i32, %c0_i32_0 : i32, i32, i32
  }
}

</mosaic_0001>

<bundles_post_ra>
// kernel: tpu_custom_call.1
= control target key start
LH: loop header
LB: loop body
LE: loop exit
PB: predicated region body
PF: predicated region fallthrough
CT: control target
= control target key end

     0   :  { %10 = vsyncpa [#allocation3], 0  ;;  %s780_s0 = inlined_call_operand.hbm [shape: f32[2,4,256], index: 0, kind: input, shape index: {}]   ;;  %s781_s1 = inlined_call_operand.vmem [shape: f32[2,4], index: 1, kind: input, shape index: {}]   ;;  %s782_s2 = inlined_call_operand.vmem [shape: f32[2,1], index: 2, kind: input, shape index: {}]   ;;  %s783_s3 = inlined_call_operand.vmem [shape: f32[4,2], index: 3, kind: input, shape index: {}]   ;;  %s784_s4 = inlined_call_operand.vmem [shape: f32[4,1], index: 4, kind: input, shape index: {}]   ;;  %s785_s5 = inlined_call_operand.hbm [shape: f32[2,4,256], index: 5, kind: output, shape index: {}]  }
   0x1   :  { %12 = vsyncpa [#allocation3 + $0x1], 0 }
   0x2   :  { %13 = vsyncpa [#allocation4], 0 }
   0x3   :  { %15 = vsyncpa [#allocation4 + $0x1], 0  ;;  %s637_s18 = smov 0   ;;  %s639_s19 = smov 0  }
   0x4   :  { %s641_s20 = smov 0   ;;  %s643_s21 = smov 0  }
   0x5 LB: > { %s658_s22 = sadd.s32 4294967295, %s603_s21   ;;  %s433_s23 = sadd.s32 4294967294, %s603_s21   ;;  %s603_s21 = sphi %s643_s21, %s795_s21   ;;  %s599_s20 = sphi %s641_s20, %s794_s20   ;;  %s595_s19 = sphi %s639_s19, %s793_s19   ;;  %s591_s18 = sphi %s637_s18, %s792_s18  }
   0x6   : > { %s662_s24 = sadd.s32 1, %s603_s21   ;;  %s28_s25 = sadd.s32 1, %s599_s20 }
   0x7   : > { %s25_s26 = ssub.s32 %s603_s21, %s662_s24  ;;  %p35_p0 = scmp.ne.s32.totalorder %s599_s20, %s595_s19 }
   0x8   : > { %p26_p1 = scmp.eq.s32.totalorder %s25_s26, 0  ;;  %p36_p2 = scmp.eq.s32.totalorder %s603_s21, 0 }
   0x9   : > { %p41_p3 = scmp.ne.s32.totalorder %s595_s19, %s591_s18  ;;  %p42_p4 = scmp.eq.s32.totalorder %s658_s22, 0 }
   0xa   : > { %s674_s27 = scalar_select %p26_p1, %s599_s20, %s28_s25  }
   0xb   : > { %p676_p5 = por %p36_p2, %p35_p0  ;;  %p680_p6 = por %p42_p4, %p41_p3 }
   0xc   : > { %p149_p7 = scmp.eq.s32.totalorder %s658_s22, 1  ;;  %p155_p8 = scmp.eq.s32.totalorder %s433_s23, 1 }
   0xd   : > { %p466_p10 = scmp.lt.s32.totalorder %s603_s21, 2  ;;  %s187_s7 = sand.u32 1, %s599_s20  }
   0xe   : > { %p687_p11 = por %p149_p7, %p35_p0  ;;  %p691_p12 = por %p155_p8, %p41_p3 }
   0xf   : > { %s452_s8 = sshll.u32 %s603_s21, 3  ;;  %s436_s9 = sshll.u32 %s187_s7, 3 }
  0x10   : > { %s196_s12 = scalar_lea.hbm %s780_s0, %s452_s8  ;;  %s191_s14 = scalar_lea.vmem [#allocation2], %s436_s9 }
  0x11   : > { %s198_s13 = sshll.u32 %s196_s12, 4  ;;  %s200_s15 = sshll.u32 %s191_s14, 4  ;;  %s199_s13 = int_to_ptr.hbm [resolvable:$true] %s198_s13  ;;  %s201_s15 = int_to_ptr.vmem [resolvable:$true] %s200_s15 }
  0x12   : > { %p702_p13 = pnand %p466_p10, %p676_p5  ;;  %p439_p0 = scmp.ge.s32.totalorder %s603_s21, 1 }
  0x13   : > { %p205_p1 = scmp.lt.s32.totalorder %s603_s21, 3  ;;  %s188_s17 = scalar_lea.sflag [#allocation3], %s187_s7 }
  0x14   : > { %s507_s23 = sshra.s32 %s199_s13, 4  ;;  %p511_p3 = pneg %p702_p13  ;;  %s508_s23 = int_to_ptr.hbm [resolvable:$true] %s507_s23 }
  0x15   : > { %s509_s25 = scalar_lea.hbm %s508_s23, 8  ;;  %s514_s28 = scalar_lea.hbm %s780_s0, 16 }
  0x16   : > { %p510_p2 = scmp.ne.s32.totalorder %s508_s23, %s509_s25  ;;  %p515_p5 = scmp.lt.s32.totalorder %s508_s23, %s780_s0 }
  0x17   : > { %p516_p8 = scmp.lt.s32.totalorder %s514_s28, %s509_s25 }
  0x18   : > { %p512_p4 = pnand %p511_p3, %p510_p2 }
  0x19   : > { %p517_p10 = por %p516_p8, %p515_p5 }
  0x1a   : > { %p513_p7 = pneg %p512_p4 }
  0x1c   : > { %p518_p9 = pnand %p517_p10, %p513_p7 }
  0x1e   : > { %521 = shalt.err (!%p518_p9)
}
  0x1f   : > { %461 = dma.hbm_to_vmem [thread:$0]  (!%p702_p13), %s199_s13, 128, %s201_s15, %s188_s17  }
  0x20   : > { %p206_p2 = pnand %p439_p0, %p205_p1 }
  0x21   : > { %s723_s7 = sand.u32 (!%p206_p2), 1, %s595_s19  }
  0x22   : > { %209 = sbr.rel (%p206_p2) target bundleno = 578 (0x242), region = 40  ;;  %s440_s11 = sshll.u32 (!%p206_p2), %s723_s7, 3 }
  0x23   : > { %s212_s12 = scalar_lea.sflag (!%p206_p2), [#allocation3], %s723_s7  ;;  %s215_s14 = scalar_lea.vmem (!%p206_p2), [#allocation2], %s440_s11 }
  0x27   : > { %582 = dma.done.wait (%p680_p6), %s212_s12, 128  }
  0x28   : > { %584 = vsyncadd (%p680_p6), %s212_s12, 4294967168  ;;  %v243_v0 = vld [vmem:[%s215_s14] sm:$0xff]  ;;  %vm250_vm0 = vcmask 1043456   ;;  %v256_v6 = vld [vmem:[%s781_s1] sm:$0x3]  ;;  %vm258_vm1 = vcmask 31744  }
  0x29   : > { %245 = vst [vmem:[#allocation1] ss:$2 sm:$0xff] %v243_v0  ;;  %v257_v8 = vld [vmem:[%s782_s2] sm:$0x3]  ;;  %vm291_vm2 = vcmask 1041408   ;;  %vm287_vm3 = vcmask 15360  }
  0x2a   : > { %v285_v11 = vld [vmem:[%s783_s3] sm:$0xf]  ;;  %v605_v12 = vmov 0   ;;  %v606_v30 = vmov 839922192   ;;  %s453_s8 = sshll.u32 %s658_s22, 3 }
  0x2b   : > { %502 = vset.pattern.permute.xlu0 %v605_v12  ;;  %v286_v13 = vld [vmem:[%s784_s4] sm:$0xf]  ;;  %v340_v31 = vunpack.c.l.s4 %v606_v30  ;;  %s358_s10 = scalar_lea.hbm %s785_s5, %s453_s8  ;;  %s242_s12 = scalar_lea.vmem [#allocation5], %s440_s11 }
  0x2c   : > { %s360_s14 = sshll.u32 %s242_s12, 4  ;;  %s362_s13 = sshll.u32 %s358_s10, 4  ;;  %s361_s14 = int_to_ptr.vmem [resolvable:$true] %s360_s14  ;;  %s363_s13 = int_to_ptr.hbm [resolvable:$true] %s362_s13 }
  0x2d   : > { %v341_v32 = vunpack.c.0.s8 %v340_v31  ;;  %s347_s15 = scalar_lea.sflag [#allocation4], %s723_s7  ;;  %s551_s16 = sshra.s32 %s363_s13, 4  ;;  %s552_s16 = int_to_ptr.hbm [resolvable:$true] %s551_s16 }
  0x2e   : > { %s553_s22 = scalar_lea.hbm %s552_s16, 8  ;;  %s557_s23 = scalar_lea.hbm %s785_s5, 16 }
  0x2f   : > { %p554_p6 = scmp.ne.s32.totalorder %s552_s16, %s553_s22  ;;  %p558_p0 = scmp.lt.s32.totalorder %s552_s16, %s785_s5 }
  0x30   : > { %v246_v1 = vld.sshfl [vmem:[#allocation1] sm:$0xff pattern:$0x75316420]  ;;  %v247_v2 = vld.sshfl [vmem:[#allocation1 + $0x8] sm:$0xff pattern:$0x75316420]  ;;  %p559_p1 = scmp.lt.s32.totalorder %s557_s23, %s553_s22 }
  0x31   : > { %v251_v3 = vsel %vm250_vm0, %v246_v1, -inf  ;;  %v252_v4 = vsel %vm250_vm0, %v247_v2, -inf  ;;  %p555_p9 = pnand %p554_p6, %p687_p11 }
  0x32   : > { %v253_v5 = vmax.f32 %v251_v3, %v252_v4  ;;  %p560_p3 = por %p559_p1, %p558_p0 }
  0x33   : > { %p556_p13 = pneg %p555_p9 }
  0x34   : > { %254 = vmax.xlane.f32.xlu0 %v253_v5 }
  0x35   : > { %p561_p4 = pnand %p560_p3, %p556_p13 }
  0xa7   : > { %v255_v7 = vpop.xlane.xlu0 %254 }
  0xa8   : > { %442 = vmatpush.msk.msra.mxu0 %vm250_vm0, %v255_v7 }
  0xa9   : > { %443 = vmatmul.msk.f32.vlgmr.msra.gmra.mxu0 %vm258_vm1, %v256_v6 }
 0x126   : > { %v282_v9 = vpop.f32.mrf.mxu0 }
 0x127   : > { %v283_v10 = vadd.f32 %v282_v9, %v257_v8 }
 0x129   : > { %444 = vmatpush.msk.msra.mxu1 %vm291_vm2, %v283_v10 }
 0x12a   : > { %445 = vmatmul.msk.f32.vlgmr.msra.gmra.mxu1 %vm287_vm3, %v285_v11 }
 0x1a7   : > { %v312_v14 = vpop.f32.mrf.mxu1 }
 0x1a8   : > { %v313_v15 = vadd.f32 %v312_v14, %v286_v13 }
 0x1aa   : > { %v446_v16 = vmul.f32 -1.442695, %v313_v15 }
 0x1ac   : > { %503 = vpow2.f32 %v446_v16 }
 0x1b2   : > { %v504_v17 = vpop.eup %503 }
 0x1b3   : > { %v318_v18 = vadd.f32 1.0, %v504_v17 }
 0x1b5   : > { %505 = vrcp.f32 %v318_v18  ;;  %v330_v22 = vand.u32 2147483648, %v318_v18  ;;  %v328_v24 = vand.u32 2147483647, %v318_v18  ;;  %vm324_vm5 = vweird.f32 %v318_v18 }
 0x1b7   : > { %v331_v26 = vor.u32 1.1754944e-38, %v330_v22  ;;  %vm329_vm7 = vcmp.eq.f32.partialorder %v328_v24, 8.507059e+37 }
 0x1bb   : > { %v506_v19 = vpop.eup %505 }
 0x1bc   : > { %v320_v20 = vmul.f32 %v506_v19, %v318_v18  ;;  %vm325_vm4 = vweird.f32 %v506_v19 }
 0x1bd   : > { %vm326_vm6 = vmor %vm324_vm5, %vm325_vm4 }
 0x1be   : > { %v321_v21 = vsub.f32 1.0, %v320_v20 }
 0x1c0   : > { %v322_v23 = vmul.f32 %v506_v19, %v321_v21 }
 0x1c2   : > { %v323_v25 = vadd.f32 %v506_v19, %v322_v23 }
 0x1c4   : > { %v327_v27 = vsel %vm326_vm6, %v506_v19, %v323_v25 }
 0x1c5   : > { %v332_v28 = vsel %vm329_vm7, %v331_v26, %v327_v27 }
 0x1c6   : > { %v334_v29 = vmul.f32 2.0, %v332_v28 }
 0x1c8   : > { %337 = vperm.xlu0 %502, %v334_v29  }
 0x23a   : > { %v338_v33 = vpop.permute.xlu0 %337 }
 0x23b   : > { %v342_v34 = vperm.slane %v338_v33, %v341_v32 }
 0x23d   : > { %v344_v35 = vmul.f32 %v342_v34, %v243_v0 }
 0x23f   : > { %345 = vst [vmem:[%s242_s12] sm:$0xff] %v344_v35 }
 0x240   : > { %564 = shalt.err (!%p561_p4)
}
 0x241   : > { %456 = dma.vmem_to_hbm [thread:$0]  (%p687_p11), %s361_s14, 128, %s363_s13, %s347_s15  }
 0x242 PF: > { %s374_s7 = sand.u32 1, %s591_s18   ;;  %p791_p7 = scmp.ge.s32.totalorder %s603_s21, 2 }
 0x243   : > { %s375_s26 = scalar_lea.sflag [#allocation4], %s374_s7 }
 0x244   : > { %p463_p5 = pnand %p791_p7, %p691_p12 }
 0x246   : > { %p464_p8 = pneg %p463_p5 }
 0x248   : > { %586 = dma.done.wait (%p464_p8), %s375_s26, 128  }
 0x249   : > { %588 = vsyncadd (%p464_p8), %s375_s26, 4294967168  ;;  %p18_p10 = scmp.ge.s32.totalorder %s662_s24, 4   ;;  %s792_s18 = smov %s595_s19 }
 0x24a   : > { %s793_s19 = smov %s599_s20  ;;  %s794_s20 = smov %s674_s27 }
 0x24b   : > { %s795_s21 = smov %s662_s24  ;;  %20 = sbr.rel (!%p18_p10) target bundleno = 5 (0x5), region = 85 }
 0x250   :  { %381 = vsyncpa [#allocation3], 1 }
 0x251   :  { %383 = vsyncpa [#allocation3 + $0x1], 1 }
 0x252   :  { %384 = vsyncpa [#allocation4], 1 }
 0x253   :  { %386 = vsyncpa [#allocation4 + $0x1], 1 }

</bundles_post_ra>
